<compile_context>
chip_gen: v7x
topology: tpu7x:2x2x1
jax: 0.10.0
libtpu: 0.0.40
codegen_flags: <defaults>
</compile_context>

<pallas_src>
import functools

import numpy as np
import jax
import jax.numpy as jnp
from jax import lax
from jax.experimental import pallas as pl
from jax.experimental.pallas import tpu as pltpu

EPS = 1e-5  # PyTorch LayerNorm default eps


def _round_up(x, m):
    return ((x + m - 1) // m) * m


def _ln(x, w, b):
    """LayerNorm over the last axis (biased variance, like torch.nn.LayerNorm)."""
    mu = jnp.mean(x, axis=-1, keepdims=True)
    var = jnp.mean((x - mu) ** 2, axis=-1, keepdims=True)
    return (x - mu) * lax.rsqrt(var + EPS) * w + b


# ----------------------------- Pallas kernels -----------------------------

def _embed_kernel(p_ref, w_ref, cls_ref, pos_ref, lnw_ref, lnb_ref, o_ref, *, seq_real):
    """Patch embedding + CLS row + positional add + ln_pre for one image.

    Internal token order is [patch_0..patch_{P-1}, cls, padding]; the positional
    embedding was permuted the same way at prep time (attention is permutation
    equivariant, only the CLS row index changes downstream).
    """
    L_pad, Wd = o_ref.shape[1], o_ref.shape[2]

    emb = jnp.dot(p_ref[0], w_ref[...], preferred_element_type=jnp.float32)   # (P, Wd)
    parts = [emb, cls_ref[...]]
    if L_pad > seq_real:
        parts.append(jnp.zeros((L_pad - seq_real, Wd), jnp.float32))
    tok = jnp.concatenate(parts, axis=0) + pos_ref[...]
    o_ref[0] = _ln(tok, lnw_ref[...], lnb_ref[...])        # single full-block store


def _transformer_kernel(x_ref, wqkv_ref, bqkv_ref, wo_ref, bo_ref,
                        ln1w_ref, ln1b_ref, ln2w_ref, ln2b_ref,
                        wfc_ref, bfc_ref, wpr_ref, bpr_ref,
                        lnpw_ref, lnpb_ref, proj_ref,
                        o_ref, state_ref, attn_ref, *opt_scratch,
                        num_heads, seq_real, n_f4):
    """One (batch_group g, layer l, mlp_chunk f) grid step of the CLIP transformer."""
    l = pl.program_id(1)
    f = pl.program_id(2)
    nl = pl.num_programs(1)
    bf16 = jnp.bfloat16

    Bc, L, Wd = x_ref.shape
    hd = Wd // num_heads
    M = Bc * L

    @pl.when((l == 0) & (f == 0))
    def _():
        state_ref[...] = x_ref[...].reshape(M, Wd)

    def attention_part():
        """Pre-LN MHSA + residual.  Returns (post-attn residual f32, LN2(x) bf16)."""
        x = state_ref[...]                                          # (M, Wd) f32
        xl = _ln(x, ln1w_ref[0], ln1b_ref[0])
        qkv = jnp.dot(xl.astype(bf16), wqkv_ref[0],
                      preferred_element_type=jnp.float32) + bqkv_ref[0]      # (M, 3Wd)
        q, k, v = qkv[:, :Wd], qkv[:, Wd:2 * Wd], qkv[:, 2 * Wd:]

        if L > seq_real:  # mask padded key positions
            key_pos = lax.broadcasted_iota(jnp.int32, (1, L), 1)
            neg = jnp.where(key_pos >= seq_real, jnp.float32(-1e30), jnp.float32(0.0))
        else:
            neg = None

        for b in range(Bc):                       # static, small batch chunk
            r = slice(b * L, (b + 1) * L)
            heads_out = []
            for h in range(num_heads):            # static, small head count
                c = slice(h * hd, (h + 1) * hd)
                qh = q[r, c].astype(bf16)
                kh = k[r, c].astype(bf16)
                vh = v[r, c].astype(bf16)
                s = lax.dot_general(qh, kh, (((1,), (1,)), ((), ())),
                                    preferred_element_type=jnp.float32)      # (L, L)
                if neg is not None:
                    s = s + neg
                s = s - jnp.max(s, axis=-1, keepdims=True)
                p = jnp.exp(s)
                inv = pl.reciprocal(jnp.sum(p, axis=-1, keepdims=True), approx=True)
                hv = jnp.dot(p.astype(bf16), vh, preferred_element_type=jnp.float32)
                heads_out.append(hv * inv)
            # one lane-dense (L, Wd) bf16 store per image instead of per-head masked stores
            attn_ref[r, :] = jnp.concatenate(heads_out, axis=-1).astype(bf16)

        # single full-depth out-projection over the concatenated heads
        attn = jnp.dot(attn_ref[...], wo_ref[0],
                       preferred_element_type=jnp.float32) + bo_ref[0]
        x = x + attn
        xl2 = _ln(x, ln2w_ref[0], ln2b_ref[0]).astype(bf16)   # MLP LHS, kept bf16
        return x, xl2

    def mlp_chunk(xl2_bf16):
        h1 = jnp.dot(xl2_bf16, wfc_ref[0],
                     preferred_element_type=jnp.float32) + bfc_ref[0]
        h1 = h1 * jax.nn.sigmoid(1.702 * h1)                  # QuickGELU (f32)
        return jnp.dot(h1.astype(bf16), wpr_ref[0], preferred_element_type=jnp.float32)

    if n_f4 == 1:
        # Single-chunk MLP: no scratch round trip for the LN2 activations.
        x_new, xl2 = attention_part()
        state_ref[...] = x_new + mlp_chunk(xl2) + bpr_ref[0]
    else:
        xl2_ref = opt_scratch[0]

        @pl.when(f == 0)
        def _():
            x_new, xl2 = attention_part()
            xl2_ref[...] = xl2
            state_ref[...] = x_new + bpr_ref[0]     # MLP output bias added once

        # every f: accumulate one F4 chunk of the MLP into the residual stream
        state_ref[...] = state_ref[...] + mlp_chunk(xl2_ref[...])

    # ---- ln_post + projection of the CLS rows after the last layer / last chunk ----
    @pl.when((l == nl - 1) & (f == n_f4 - 1))
    def _():
        ci = seq_real - 1                                     # CLS row index per image
        cls_rows = [state_ref[b * L + ci: b * L + ci + 1, :] for b in range(Bc)]
        cls = _ln(jnp.concatenate(cls_rows, axis=0), lnpw_ref[...], lnpb_ref[...])
        o_ref[0] = jnp.dot(cls.astype(bf16), proj_ref[...],
                           preferred_element_type=jnp.float32)


# ----------------------------- pallas_call wrappers -----------------------------

def embed_tokens(patches, prep):
    B, P, K = patches.shape
    Wd = prep['width']
    L_pad = prep['seq_pad']
    kernel = functools.partial(_embed_kernel, seq_real=prep['seq_real'])
    return pl.pallas_call(
        kernel,
        out_shape=jax.ShapeDtypeStruct((B, L_pad, Wd), jnp.float32),
        grid=(B,),
        in_specs=[pl.BlockSpec((1, P, K), lambda b: (b, 0, 0)),
                  pl.BlockSpec((K, Wd), lambda b: (0, 0)),
                  pl.BlockSpec((1, Wd), lambda b: (0, 0)),
                  pl.BlockSpec((L_pad, Wd), lambda b: (0, 0)),
                  pl.BlockSpec((1, Wd), lambda b: (0, 0)),
                  pl.BlockSpec((1, Wd), lambda b: (0, 0))],
        out_specs=pl.BlockSpec((1, L_pad, Wd), lambda b: (b, 0, 0)),
        compiler_params=pltpu.CompilerParams(dimension_semantics=("parallel",)),
    )(patches, prep['w_patch'], prep['cls'], prep['pos'],
      prep['ln_pre_w'], prep['ln_pre_b'])


def transformer_head(tokens, prep, *, batch_chunk=4, f4_tile=None):
    B, L_pad, Wd = tokens.shape
    n_layers = prep['wqkv'].shape[0]
    F4 = prep['wfc'].shape[2]
    D = prep['proj'].shape[1]

    # ---- generation-aware VMEM budget ----
    try:
        cap = int(getattr(pltpu.get_tpu_info(), 'vmem_capacity_bytes', 64 << 20))
    except Exception:
        cap = 64 << 20
    budget = max(cap - (8 << 20), 16 << 20)

    # Double-buffered bf16 per-layer weight blocks as a function of the F4 tile.
    def wdb_bytes(t):
        return 2 * 2 * 2 * (Wd * 3 * Wd + Wd * Wd + 2 * Wd * t) // 2  # = 4*(4Wd^2+2Wd*t)

    # ---- F4 (MLP hidden) tiling so the weights fit (needed for ViT-L on v7x) ----
    if f4_tile is None:
        cands = [F4] + [t for t in range(128, F4, 128) if F4 % t == 0]
        cands = sorted(set(cands), reverse=True)
        f4_tile = cands[-1]
        for t in cands:
            if wdb_bytes(t) <= budget // 2:
                f4_tile = t
                break
    assert F4 % f4_tile == 0 and (f4_tile == F4 or f4_tile % 128 == 0)
    n_f4 = F4 // f4_tile

    # ---- batch chunk so weights + activations fit the budget ----
    def act_bytes(bc):
        per = bc * L_pad * Wd
        bb = 4 * per                       # residual state scratch (f32)
        bb += 2 * per                      # attn scratch (bf16)
        bb += 2 * per if n_f4 > 1 else 0   # LN2 activation scratch (bf16)
        bb += 2 * 4 * per                  # tokens input block, double-buffered f32
        bb += 4 * bc * L_pad * 3 * Wd      # qkv f32 intermediate
        bb += 4 * bc * L_pad * f4_tile     # MLP hidden chunk f32 intermediate
        bb += 8 * per                      # misc intermediates / slack
        return bb

    max_bc = max(1, min(B, batch_chunk))
    Bc = 1
    for bc in range(1, max_bc + 1):
        if B % bc == 0 and wdb_bytes(f4_tile) + act_bytes(bc) <= budget:
            Bc = bc
    nG = B // Bc

    vmem_limit = int(min(budget,
                         max(32 << 20, wdb_bytes(f4_tile) + act_bytes(Bc) + (4 << 20))))

    def per_l(a):
        nd = a.ndim
        return pl.BlockSpec((1,) + a.shape[1:], lambda g, l, f: (l,) + (0,) * (nd - 1))

    def const(a):
        nd = a.ndim
        return pl.BlockSpec(a.shape, lambda g, l, f: (0,) * nd)

    kernel = functools.partial(_transformer_kernel, num_heads=prep['num_heads'],
                               seq_real=prep['seq_real'], n_f4=n_f4)

    scratch = [pltpu.VMEM((Bc * L_pad, Wd), jnp.float32),    # resident residual stream
               pltpu.VMEM((Bc * L_pad, Wd), jnp.bfloat16)]   # concatenated head outputs
    if n_f4 > 1:
        scratch.append(pltpu.VMEM((Bc * L_pad, Wd), jnp.bfloat16))  # LN2 activations

    out = pl.pallas_call(
        kernel,
        out_shape=jax.ShapeDtypeStruct((nG, Bc, D), jnp.float32),
        grid=(nG, n_layers, n_f4),
        in_specs=[pl.BlockSpec((Bc, L_pad, Wd), lambda g, l, f: (g, 0, 0)),
                  per_l(prep['wqkv']), per_l(prep['bqkv']),
                  per_l(prep['wo']), per_l(prep['bo']),
                  per_l(prep['ln1w']), per_l(prep['ln1b']),
                  per_l(prep['ln2w']), per_l(prep['ln2b']),
                  pl.BlockSpec((1, Wd, f4_tile), lambda g, l, f: (l, 0, f)),
                  pl.BlockSpec((1, 1, f4_tile), lambda g, l, f: (l, 0, f)),
                  pl.BlockSpec((1, f4_tile, Wd), lambda g, l, f: (l, f, 0)),
                  per_l(prep['bpr']),
                  const(prep['ln_post_w']), const(prep['ln_post_b']),
                  const(prep['proj'])],
        out_specs=pl.BlockSpec((1, Bc, D), lambda g, l, f: (g, 0, 0)),
        scratch_shapes=scratch,
        compiler_params=pltpu.CompilerParams(
            dimension_semantics=("parallel", "arbitrary", "arbitrary"),
            vmem_limit_bytes=vmem_limit),
    )(tokens, prep['wqkv'], prep['bqkv'], prep['wo'], prep['bo'],
      prep['ln1w'], prep['ln1b'], prep['ln2w'], prep['ln2b'],
      prep['wfc'], prep['bfc'], prep['wpr'], prep['bpr'],
      prep['ln_post_w'], prep['ln_post_b'], prep['proj'])
    return out.reshape(B, D)


# ----------------------------- parameter preparation -----------------------------

def prepare_params(params, *, num_heads, patch_size):
    """One-time layout work: transposes, dtype casts, stacking, scale folding."""
    f32, bf16 = jnp.float32, jnp.bfloat16
    width = params['class_embedding'].shape[0]
    hd = width // num_heads
    L_real = params['positional_embedding'].shape[0]
    # 16-alignment: bf16 sublane packing; 128-row padding would inflate the dominant
    # projection/MLP MXU work by ~25-30% for CLIP sequence lengths (see header note).
    L_pad = _round_up(L_real, 16)

    # permute positional embedding to the internal [patches..., cls, pad] order
    pos = params['positional_embedding'].astype(f32)
    pos = jnp.concatenate([pos[1:], pos[0:1]], axis=0)
    if L_pad > L_real:
        pos = jnp.concatenate([pos, jnp.zeros((L_pad - L_real, width), f32)], axis=0)

    layers = params['layers']
    wqkv = jnp.stack([lp['in_proj_w'].T for lp in layers])                 # (n, W, 3W)
    bqkv = jnp.stack([lp['in_proj_b'] for lp in layers])[:, None, :]       # (n, 1, 3W)
    # fold the 1/sqrt(head_dim) query scaling into the q part of the projection
    wqkv = wqkv.at[:, :, :width].multiply(hd ** -0.5)
    bqkv = bqkv.at[:, :, :width].multiply(hd ** -0.5)

    def stack_vec(name):
        return jnp.stack([lp[name] for lp in layers])[:, None, :].astype(f32)

    return dict(
        width=width, num_heads=num_heads, patch_size=patch_size,
        pe_grid_size=params['pe_grid_size'],
        seq_real=L_real, seq_pad=L_pad,
        w_patch=params['conv1_w'].reshape(width, -1).T.astype(bf16),       # (K, W)
        cls=params['class_embedding'][None, :].astype(f32),
        pos=pos,
        ln_pre_w=params['ln_pre_w'][None, :].astype(f32),
        ln_pre_b=params['ln_pre_b'][None, :].astype(f32),
        wqkv=wqkv.astype(bf16), bqkv=bqkv.astype(f32),
        wo=jnp.stack([lp['out_w'].T for lp in layers]).astype(bf16),
        bo=stack_vec('out_b'),
        ln1w=stack_vec('ln1_w'), ln1b=stack_vec('ln1_b'),
        ln2w=stack_vec('ln2_w'), ln2b=stack_vec('ln2_b'),
        wfc=jnp.stack([lp['fc_w'].T for lp in layers]).astype(bf16),       # (n, W, 4W)
        bfc=stack_vec('fc_b'),
        wpr=jnp.stack([lp['proj_w'].T for lp in layers]).astype(bf16),     # (n, 4W, W)
        bpr=stack_vec('proj_b'),
        ln_post_w=params['ln_post_w'][None, :].astype(f32),
        ln_post_b=params['ln_post_b'][None, :].astype(f32),
        proj=params['proj'].astype(bf16),
    )


# ----------------------------- full forward -----------------------------

def vision_transformer_forward(x, prep, *, return_tokens=False, attn_masks=None,
                               batch_chunk=4, f4_tile=None):
    # TODO(synk): attn_masks support is not implemented (module is called with None here).
    assert attn_masks is None
    if return_tokens:
        # TODO(synk): return_tokens / cls_indices path needs Transformer internals not given.
        raise NotImplementedError("return_tokens=True not supported")

    B, C, H, W_img = x.shape
    p = prep['patch_size']
    gh, gw = H // p, W_img // p
    # TODO(synk): rescale_positional_embedding (bilinear PE interp for grid != pe_grid) not ported.
    assert gh == gw and gh == prep['pe_grid_size']

    # conv1 (stride == kernel_size, no bias) == extract patches + matmul (layout glue).
    # Patches are only ever an MXU LHS -> pre-cast to bf16 (halves embed-kernel DMA).
    patches = (x.reshape(B, C, gh, p, gw, p)
                .transpose(0, 2, 4, 1, 3, 5)
                .reshape(B, gh * gw, C * p * p)).astype(jnp.bfloat16)

    tokens = embed_tokens(patches, prep)                       # (B, L_pad, width) f32
    cls_feat = transformer_head(tokens, prep, batch_chunk=batch_chunk, f4_tile=f4_tile)
    return cls_feat, None


# ----------------------------- parameters & reference -----------------------------

def init_params(key, *, input_resolution, patch_size, width, layers, heads, output_dim):
    del heads
    grid = input_resolution // patch_size
    L = grid * grid + 1
    scale = width ** -0.5
    keys = jax.random.split(key, 4 + layers)

    def n(k, shape, s):
        return (s * jax.random.normal(k, shape)).astype(jnp.float32)

    params = {
        'pe_grid_size': grid,
        'conv1_w': n(keys[0], (width, 3, patch_size, patch_size),
                     (3 * patch_size * patch_size) ** -0.5),
        'class_embedding': n(keys[1], (width,), scale),
        'positional_embedding': n(keys[2], (L, width), scale),
        'ln_pre_w': jnp.ones((width,), jnp.float32),
        'ln_pre_b': jnp.zeros((width,), jnp.float32),
        'ln_post_w': jnp.ones((width,), jnp.float32),
        'ln_post_b': jnp.zeros((width,), jnp.float32),
        'proj': n(keys[3], (width, output_dim), scale),
        'layers': [],
    }
    for i in range(layers):
        lk = jax.random.split(keys[4 + i], 8)
        attn_std = width ** -0.5
        fc_std = (4 * width) ** -0.5
        params['layers'].append({
            'in_proj_w': n(lk[0], (3 * width, width), attn_std),
            'in_proj_b': n(lk[1], (3 * width,), 0.02),
            'out_w': n(lk[2], (width, width), attn_std),
            'out_b': n(lk[3], (width,), 0.02),
            'ln1_w': jnp.ones((width,), jnp.float32),
            'ln1_b': jnp.zeros((width,), jnp.float32),
            'ln2_w': jnp.ones((width,), jnp.float32),
            'ln2_b': jnp.zeros((width,), jnp.float32),
            'fc_w': n(lk[4], (4 * width, width), attn_std),
            'fc_b': n(lk[5], (4 * width,), 0.02),
            'proj_w': n(lk[6], (width, 4 * width), fc_std),
            'proj_b': n(lk[7], (width,), 0.02),
        })
    return params


def _ref_block(x, lp, H):
    B, L, Wd = x.shape
    hd = Wd // H
    xl = _ln(x, lp['ln1_w'], lp['ln1_b'])
    qkv = jnp.einsum('blw,ew->ble', xl, lp['in_proj_w']) + lp['in_proj_b']
    q, k, v = jnp.split(qkv, 3, axis=-1)
    q = (q * hd ** -0.5).reshape(B, L, H, hd).transpose(0, 2, 1, 3)
    k = k.reshape(B, L, H, hd).transpose(0, 2, 1, 3)
    v = v.reshape(B, L, H, hd).transpose(0, 2, 1, 3)
    a = jax.nn.softmax(jnp.einsum('bhqd,bhkd->bhqk', q, k), axis=-1)
    o = jnp.einsum('bhqk,bhkd->bhqd', a, v).transpose(0, 2, 1, 3).reshape(B, L, Wd)
    o = jnp.einsum('blw,ew->ble', o, lp['out_w']) + lp['out_b']
    x = x + o
    xl2 = _ln(x, lp['ln2_w'], lp['ln2_b'])
    h1 = jnp.einsum('blw,ew->ble', xl2, lp['fc_w']) + lp['fc_b']
    h1 = h1 * jax.nn.sigmoid(1.702 * h1)
    m = jnp.einsum('ble,we->blw', h1, lp['proj_w']) + lp['proj_b']
    return x + m


def reference_forward(x, params, *, num_heads, patch_size):
    width = params['class_embedding'].shape[0]
    out = lax.conv_general_dilated(
        x, params['conv1_w'], window_strides=(patch_size, patch_size),
        padding='VALID', dimension_numbers=('NCHW', 'OIHW', 'NCHW'))
    B = out.shape[0]
    t = out.reshape(B, width, -1).transpose(0, 2, 1)
    cls = jnp.broadcast_to(params['class_embedding'][None, None, :], (B, 1, width))
    t = jnp.concatenate([cls, t], axis=1) + params['positional_embedding']
    t = _ln(t, params['ln_pre_w'], params['ln_pre_b'])
    for lp in params['layers']:
        t = _ref_block(t, lp, num_heads)
    cls_out = _ln(t[:, 0, :], params['ln_post_w'], params['ln_post_b'])
    return cls_out @ params['proj']


if __name__ == "__main__":
    B = 4
    input_resolution = 32
    patch_size = 8
    width = 64
    layers = 2
    heads = 4
    output_dim = 32

    key = jax.random.PRNGKey(0)
    pkey, xkey = jax.random.split(key)
    params = init_params(pkey, input_resolution=input_resolution, patch_size=patch_size,
                         width=width, layers=layers, heads=heads, output_dim=output_dim)
    x = jax.random.normal(xkey, (B, 3, input_resolution, input_resolution), jnp.float32)

    prep = prepare_params(params, num_heads=heads, patch_size=patch_size)
    # batch_chunk=2 exercises the batch fold (2 images / grid step, 2 groups);
    # f4_tile=128 with F4=256 exercises the MLP F4-chunking path (n_f4=2).
    cls_feat, image_tokens = vision_transformer_forward(
        x, prep, return_tokens=False, batch_chunk=2, f4_tile=128)
    cls_feat = jax.block_until_ready(cls_feat)

    ref = reference_forward(x, params, num_heads=heads, patch_size=patch_size)
    # bf16 MXU operands + approx reciprocal -> slightly relaxed tolerance vs f32 reference
    np.testing.assert_allclose(np.asarray(cls_feat), np.asarray(ref), rtol=3e-2, atol=3e-2)
    assert image_tokens is None
    print("KERNEL_OK")
</pallas_src>

<mosaic_0001>
module attributes {stable_mosaic.version = 11 : i64} {
  func.func @_embed_kernel(%arg0: i32, %arg1: memref<1x16x192xbf16, #tpu.memory_space<vmem>>, %arg2: memref<192x64xbf16, #tpu.memory_space<vmem>>, %arg3: memref<1x64xf32, #tpu.memory_space<vmem>>, %arg4: memref<32x64xf32, #tpu.memory_space<vmem>>, %arg5: memref<1x64xf32, #tpu.memory_space<vmem>>, %arg6: memref<1x64xf32, #tpu.memory_space<vmem>>, %arg7: memref<1x32x64xf32, #tpu.memory_space<vmem>>) attributes {dimension_semantics = [#tpu.dimension_semantics<parallel>], iteration_bounds = array<i64: 4>, scalar_prefetch = 0 : i64, scratch_operands = 0 : i64, tpu.core_type = #tpu.core_type<tc>, window_params = [{transform_indices = @transform_0, window_bounds = array<i64: 1, 16, 192>}, {pipeline_mode = #tpu.pipeline_mode<synchronous>, transform_indices = @transform_1, window_bounds = array<i64: 192, 64>}, {pipeline_mode = #tpu.pipeline_mode<synchronous>, transform_indices = @transform_2, window_bounds = array<i64: 1, 64>}, {pipeline_mode = #tpu.pipeline_mode<synchronous>, transform_indices = @transform_3, window_bounds = array<i64: 32, 64>}, {pipeline_mode = #tpu.pipeline_mode<synchronous>, transform_indices = @transform_4, window_bounds = array<i64: 1, 64>}, {pipeline_mode = #tpu.pipeline_mode<synchronous>, transform_indices = @transform_5, window_bounds = array<i64: 1, 64>}, {transform_indices = @transform_6, window_bounds = array<i64: 1, 32, 64>}]} {
    %c0 = arith.constant 0 : index
    %c0_0 = arith.constant 0 : index
    %c0_1 = arith.constant 0 : index
    %0 = vector.load %arg1[%c0, %c0_0, %c0_1] : memref<1x16x192xbf16, #tpu.memory_space<vmem>>, vector<1x16x192xbf16>
    %1 = vector.shape_cast %0 : vector<1x16x192xbf16> to vector<16x192xbf16>
    %c0_2 = arith.constant 0 : index
    %c0_3 = arith.constant 0 : index
    %2 = vector.load %arg2[%c0_2, %c0_3] : memref<192x64xbf16, #tpu.memory_space<vmem>>, vector<192x64xbf16>
    %cst = arith.constant dense<0.000000e+00> : vector<16x64xf32>
    %3 = tpu.matmul %1, %2, %cst {dimension_numbers = #tpu.dot_dimension_numbers<[1], [0], [0], [1], [0, 0, 1, 1], [], []>} : vector<16x192xbf16>, vector<192x64xbf16>, vector<16x64xf32> -> vector<16x64xf32>
    %c0_4 = arith.constant 0 : index
    %c0_5 = arith.constant 0 : index
    %4 = vector.load %arg3[%c0_4, %c0_5] : memref<1x64xf32, #tpu.memory_space<vmem>>, vector<1x64xf32>
    %cst_6 = arith.constant 0.000000e+00 : f32
    %5 = vector.broadcast %cst_6 : f32 to vector<15x64xf32>
    %6 = tpu.concatenate %3, %4, %5 in 0 : vector<16x64xf32>, vector<1x64xf32>, vector<15x64xf32> -> vector<32x64xf32>
    %c0_7 = arith.constant 0 : index
    %c0_8 = arith.constant 0 : index
    %7 = vector.load %arg4[%c0_7, %c0_8] : memref<32x64xf32, #tpu.memory_space<vmem>>, vector<32x64xf32>
    %8 = arith.addf %6, %7 : vector<32x64xf32>
    %c0_9 = arith.constant 0 : index
    %c0_10 = arith.constant 0 : index
    %9 = vector.load %arg5[%c0_9, %c0_10] : memref<1x64xf32, #tpu.memory_space<vmem>>, vector<1x64xf32>
    %c0_11 = arith.constant 0 : index
    %c0_12 = arith.constant 0 : index
    %10 = vector.load %arg6[%c0_11, %c0_12] : memref<1x64xf32, #tpu.memory_space<vmem>>, vector<1x64xf32>
    %cst_13 = arith.constant dense<0.000000e+00> : vector<32xf32>
    %11 = vector.multi_reduction <add>, %8, %cst_13 [1] : vector<32x64xf32> to vector<32xf32>
    %12 = vector.shape_cast %11 : vector<32xf32> to vector<32x1xf32>
    %cst_14 = arith.constant 6.400000e+01 : f32
    %13 = vector.broadcast %cst_14 : f32 to vector<32x1xf32>
    %14 = arith.divf %12, %13 : vector<32x1xf32>
    %15 = vector.broadcast %14 : vector<32x1xf32> to vector<32x64xf32>
    %16 = arith.subf %8, %15 : vector<32x64xf32>
    %17 = arith.mulf %16, %16 : vector<32x64xf32>
    %cst_15 = arith.constant dense<0.000000e+00> : vector<32xf32>
    %18 = vector.multi_reduction <add>, %17, %cst_15 [1] : vector<32x64xf32> to vector<32xf32>
    %19 = vector.shape_cast %18 : vector<32xf32> to vector<32x1xf32>
    %cst_16 = arith.constant 6.400000e+01 : f32
    %20 = vector.broadcast %cst_16 : f32 to vector<32x1xf32>
    %21 = arith.divf %19, %20 : vector<32x1xf32>
    %22 = vector.broadcast %14 : vector<32x1xf32> to vector<32x64xf32>
    %23 = arith.subf %8, %22 : vector<32x64xf32>
    %cst_17 = arith.constant 9.99999974E-6 : f32
    %24 = vector.broadcast %cst_17 : f32 to vector<32x1xf32>
    %25 = arith.addf %21, %24 : vector<32x1xf32>
    %26 = math.rsqrt %25 : vector<32x1xf32>
    %27 = vector.broadcast %26 : vector<32x1xf32> to vector<32x64xf32>
    %28 = arith.mulf %23, %27 : vector<32x64xf32>
    %29 = vector.broadcast %9 : vector<1x64xf32> to vector<32x64xf32>
    %30 = arith.mulf %28, %29 : vector<32x64xf32>
    %31 = vector.broadcast %10 : vector<1x64xf32> to vector<32x64xf32>
    %32 = arith.addf %30, %31 : vector<32x64xf32>
    %c0_18 = arith.constant 0 : index
    %c0_19 = arith.constant 0 : index
    %c0_20 = arith.constant 0 : index
    %33 = vector.load %arg7[%c0_18, %c0_19, %c0_20] : memref<1x32x64xf32, #tpu.memory_space<vmem>>, vector<1x32x64xf32>
    %34 = vector.shape_cast %33 : vector<1x32x64xf32> to vector<32x64xf32>
    %35 = vector.shape_cast %32 : vector<32x64xf32> to vector<1x32x64xf32>
    tpu.vector_store %arg7[%c0_18, %c0_19, %c0_20], %35 {strides = array<i32>} : memref<1x32x64xf32, #tpu.memory_space<vmem>>, vector<1x32x64xf32>,
    return
  }
  func.func @transform_0(%arg0: i32) -> (i32, i32, i32) {
    %c0_i32 = arith.constant 0 : i32
    %c0_i32_0 = arith.constant 0 : i32
    %c0_i32_1 = arith.constant 0 : i32
    return %arg0, %c0_i32, %c0_i32_0 : i32, i32, i32
  }
  func.func @transform_1(%arg0: i32) -> (i32, i32) {
    %c0_i32 = arith.constant 0 : i32
    %c0_i32_0 = arith.constant 0 : i32
    %c0_i32_1 = arith.constant 0 : i32
    return %c0_i32, %c0_i32_0 : i32, i32
  }
  func.func @transform_2(%arg0: i32) -> (i32, i32) {
    %c0_i32 = arith.constant 0 : i32
    %c0_i32_0 = arith.constant 0 : i32
    %c0_i32_1 = arith.constant 0 : i32
    return %c0_i32, %c0_i32_0 : i32, i32
  }
  func.func @transform_3(%arg0: i32) -> (i32, i32) {
    %c0_i32 = arith.constant 0 : i32
    %c0_i32_0 = arith.constant 0 : i32
    %c0_i32_1 = arith.constant 0 : i32
    return %c0_i32, %c0_i32_0 : i32, i32
  }
  func.func @transform_4(%arg0: i32) -> (i32, i32) {
    %c0_i32 = arith.constant 0 : i32
    %c0_i32_0 = arith.constant 0 : i32
    %c0_i32_1 = arith.constant 0 : i32
    return %c0_i32, %c0_i32_0 : i32, i32
  }
  func.func @transform_5(%arg0: i32) -> (i32, i32) {
    %c0_i32 = arith.constant 0 : i32
    %c0_i32_0 = arith.constant 0 : i32
    %c0_i32_1 = arith.constant 0 : i32
    return %c0_i32, %c0_i32_0 : i32, i32
  }
  func.func @transform_6(%arg0: i32) -> (i32, i32, i32) {
    %c0_i32 = arith.constant 0 : i32
    %c0_i32_0 = arith.constant 0 : i32
    %c0_i32_1 = arith.constant 0 : i32
    return %arg0, %c0_i32, %c0_i32_0 : i32, i32, i32
  }
}

</mosaic_0001>

<bundles_post_ra>
// kernel: tpu_custom_call.1
= control target key start
LH: loop header
LB: loop body
LE: loop exit
PB: predicated region body
PF: predicated region fallthrough
CT: control target
= control target key end

     0   :  { %11 = vsyncpa [#allocation3], 0  ;;  %s941_s0 = inlined_call_operand.vmem [shape: bf16[4,16,192], index: 0, kind: input, shape index: {}]   ;;  %s942_s1 = inlined_call_operand.vmem [shape: bf16[192,64], index: 1, kind: input, shape index: {}]   ;;  %s943_s2 = inlined_call_operand.vmem [shape: f32[1,64], index: 2, kind: input, shape index: {}]   ;;  %s944_s3 = inlined_call_operand.vmem [shape: f32[32,64], index: 3, kind: input, shape index: {}]   ;;  %s945_s4 = inlined_call_operand.vmem [shape: f32[1,64], index: 4, kind: input, shape index: {}]   ;;  %s946_s5 = inlined_call_operand.vmem [shape: f32[1,64], index: 5, kind: input, shape index: {}]   ;;  %s947_s6 = inlined_call_operand.hbm [shape: f32[4,32,64], index: 6, kind: output, shape index: {}]  }
   0x1   :  { %13 = vsyncpa [#allocation3 + $0x1], 0  ;;  %s768_s21 = smov 0   ;;  %s770_s22 = smov 0  }
   0x2   :  { %s772_s23 = smov 0   ;;  %s774_s24 = smov 0  }
   0x3 LB: > { %s789_s25 = sadd.s32 4294967295, %s727_s24   ;;  %s569_s26 = sadd.s32 4294967294, %s727_s24   ;;  %s727_s24 = sphi %s774_s24, %s953_s24   ;;  %s723_s23 = sphi %s772_s23, %s952_s23   ;;  %s719_s22 = sphi %s770_s22, %s951_s22   ;;  %s715_s21 = sphi %s768_s21, %s950_s21  }
   0x4   : > { %s793_s27 = sadd.s32 1, %s727_s24   ;;  %s157_s28 = sadd.s32 1, %s723_s23 }
   0x5   : > { %s154_s29 = ssub.s32 %s727_s24, %s793_s27  ;;  %p167_p0 = scmp.ne.s32.totalorder %s723_s23, %s719_s22 }
   0x6   : > { %p155_p1 = scmp.eq.s32.totalorder %s154_s29, 0  ;;  %p168_p2 = scmp.eq.s32.totalorder %s789_s25, 3 }
   0x7   : > { %p173_p3 = scmp.ne.s32.totalorder %s719_s22, %s715_s21  ;;  %p174_p4 = scmp.eq.s32.totalorder %s569_s26, 3 }
   0x8   : > { %s804_s30 = scalar_select %p155_p1, %s723_s23, %s157_s28  }
   0x9   : > { %p806_p5 = por %p168_p2, %p167_p0  ;;  %p810_p6 = por %p174_p4, %p173_p3 }
   0xa   : > { %p572_p7 = scmp.ge.s32.totalorder %s727_s24, 1  ;;  %p215_p8 = scmp.lt.s32.totalorder %s727_s24, 5 }
   0xc   : > { %p216_p9 = pnand %p572_p7, %p215_p8 }
   0xd   : > { %v642_v0 = vld [vmem:[%s942_s1] sm:$0xff] (!%p216_p9)   ;;  %v729_v1 = vmov (!%p216_p9), 0   ;;  %p245_p10 = scmp.lt.s32.totalorder (!%p216_p9), %s789_s25, 3  ;;  %v643_v2 = vld [vmem:[%s942_s1 + $0x8] sm:$0xff] (!%p216_p9)   ;;  %v644_v3 = vld [vmem:[%s942_s1 + $0x10] sm:$0xff] (!%p216_p9)   ;;  %vm358_vm0 = vcmask (!%p216_p9), 523264  }
   0xe   : > { %219 = sbr.rel (%p216_p9) target bundleno = 612 (0x264), region = 44  ;;  %362 = vmatprep.subr.bf16.mxu0 (!%p216_p9), %v729_v1  ;;  %v645_v4 = vld [vmem:[%s942_s1 + $0x18] sm:$0xff] (!%p216_p9)   ;;  %v646_v6 = vld [vmem:[%s942_s1 + $0x20] sm:$0xff] (!%p216_p9)   ;;  %v647_v7 = vld [vmem:[%s942_s1 + $0x28] sm:$0xff] (!%p216_p9)   ;;  %vm404_vm1 = vcmask (!%p216_p9), 1040384   ;;  %s242_s18 = sand.u32 (!%p216_p9), 1, %s719_s22  }
   0xf   : > { %363 = vmatpush1.bf16.msra.mxu0 (!%p216_p9), %v642_v0  ;;  %v648_v8 = vld [vmem:[%s942_s1 + $0x30] sm:$0xff] (!%p216_p9)   ;;  %v649_v9 = vld [vmem:[%s942_s1 + $0x38] sm:$0xff] (!%p216_p9)   ;;  %v650_v10 = vld [vmem:[%s942_s1 + $0x40] sm:$0xff] (!%p216_p9)   ;;  %s573_s28 = sshll.u32 (!%p216_p9), %s242_s18, 5  ;;  %s599_s11 = sshll.u32 (!%p216_p9), %s789_s25, 9 }
  0x10   : > { %364 = vmatprep.subr.bf16.mxu0 (!%p216_p9), %v729_v1  ;;  %v651_v11 = vld [vmem:[%s942_s1 + $0x48] sm:$0xff] (!%p216_p9)   ;;  %v652_v12 = vld [vmem:[%s942_s1 + $0x50] sm:$0xff] (!%p216_p9)   ;;  %v653_v13 = vld [vmem:[%s942_s1 + $0x58] sm:$0xff] (!%p216_p9)   ;;  %s244_s10 = scalar_lea.vmem (!%p216_p9), [#allocation2], %s573_s28 }
  0x11   : > { %v403_v15 = vld [vmem:[%s943_s2] sm:$0x1] (!%p216_p9)  ;;  %v408_v17 = vld [vmem:[%s944_s3 + $0x10] sm:$0xff] (!%p216_p9)  ;;  %v409_v20 = vld [vmem:[%s944_s3 + $0x18] sm:$0xff] (!%p216_p9)  ;;  %s507_s12 = sshll.u32 (!%p216_p9), %s244_s10, 4  ;;  %s897_s12 = int_to_ptr.vmem [resolvable:$true] %s507_s12 }
  0x12   : > { %v405_v16 = vsel (!%p216_p9), %vm404_vm1, %v403_v15, 0.0  ;;  %v425_v21 = vsel (!%p216_p9), %vm358_vm0, %v409_v20, 0.0  ;;  %v406_v22 = vld [vmem:[%s944_s3] sm:$0xff] (!%p216_p9)  ;;  %v407_v24 = vld [vmem:[%s944_s3 + $0x8] sm:$0xff] (!%p216_p9)  ;;  %s665_s15 = scalar_lea.vmem (!%p216_p9), %s897_s12, 512 }
  0x13   : > { %365 = vmatpush1.bf16.msra.mxu0 (!%p216_p9), %v643_v2  ;;  %v412_v18 = vadd.f32 (!%p216_p9), %v408_v17, %v405_v16  ;;  %p666_p11 = scmp.ne.s32.totalorder (!%p216_p9), %s897_s12, %s665_s15 }
  0x14   : > { %366 = vmatprep.subr.bf16.mxu0 (!%p216_p9), %v729_v1 }
  0x15   : > { %s246_s13 = scalar_select %p245_p10, %s789_s25, 3  ;;  %v422_v19 = vsel %vm358_vm0, %v412_v18, 0.0 }
  0x16   : > { %423 = vadd.xlane.f32.xlu1 %v422_v19  ;;  %s900_s25 = scalar_lea.sflag [#allocation3], %s242_s18  ;;  %p667_p12 = pnand %p666_p11, %p806_p5 }
  0x17   : > { %s598_s16 = sshll.u32 %s246_s13, 4  ;;  %367 = vmatpush1.bf16.msra.mxu0 %v644_v3  ;;  %v592_v3 = vld [vmem:[%s946_s5] ss:$0 sm:$0xff] }
  0x18   : > { %s249_s26 = scalar_lea.vmem %s941_s0, %s598_s16  ;;  %368 = vmatprep.subr.bf16.mxu0 %v729_v1  ;;  %p668_p13 = pneg %p667_p12 }
  0x19   : > { %v656_v5 = vld [vmem:[%s249_s26 + $0x4] ss:$8 sps:$4 sm:$0xff]   ;;  %v654_v14 = vld [vmem:[%s249_s26] ss:$8 sps:$4 sm:$0xff]   ;;  %s895_s26 = scalar_lea.hbm %s947_s6, %s599_s11  ;;  %s730_s16 = smov [#allocation2]  }
  0x1a   : > { %590 = vmatprep.mubr.msk.bf16.mxu0 %vm358_vm0, %v656_v5  ;;  %426 = vadd.xlane.f32.xlu1 %v425_v21  ;;  %s669_s17 = sshll.u32 %s730_s16, 4  ;;  %s670_s17 = int_to_ptr.vmem [resolvable:$false] %s669_s17 }
  0x1b   : > { %369 = vmatpush1.bf16.msra.mxu0 %v645_v4  ;;  %s671_s19 = scalar_lea.vmem %s670_s17, 1024  ;;  %p672_p0 = scmp.lt.s32.totalorder %s897_s12, %s670_s17 }
  0x1c   : > { %370 = vmatprep.subr.bf16.mxu0 %v729_v1  ;;  %p673_p1 = scmp.lt.s32.totalorder %s671_s19, %s665_s15 }
  0x1e   : > { %p674_p2 = por %p673_p1, %p672_p0 }
  0x1f   : > { %371 = vmatpush1.bf16.msra.mxu0 %v646_v6 }
  0x20   : > { %372 = vmatprep.subr.bf16.mxu0 %v729_v1  ;;  %p675_p3 = pnand %p674_p2, %p668_p13 }
  0x23   : > { %373 = vmatpush1.bf16.msra.mxu0 %v647_v7 }
  0x24   : > { %374 = vmatprep.subr.bf16.mxu0 %v729_v1 }
  0x27   : > { %375 = vmatpush1.bf16.msra.mxu0 %v648_v8 }
  0x28   : > { %376 = vmatprep.subr.bf16.mxu0 %v729_v1 }
  0x2b   : > { %377 = vmatpush1.bf16.msra.mxu0 %v649_v9 }
  0x2c   : > { %378 = vmatprep.subr.bf16.mxu0 %v729_v1 }
  0x2f   : > { %379 = vmatpush1.bf16.msra.mxu0 %v650_v10 }
  0x30   : > { %380 = vmatprep.subr.bf16.mxu0 %v729_v1 }
  0x33   : > { %381 = vmatpush1.bf16.msra.mxu0 %v651_v11 }
  0x34   : > { %382 = vmatprep.subr.bf16.mxu0 %v729_v1 }
  0x37   : > { %383 = vmatpush1.bf16.msra.mxu0 %v652_v12 }
  0x38   : > { %384 = vmatprep.subr.bf16.mxu0 %v729_v1  ;;  %v591_v1 = vld [vmem:[%s945_s4] ss:$0 sm:$0xff] }
  0x3b   : > { %385 = vmatpush1.bf16.msra.mxu0 %v653_v13 }
  0x3e   : > { %395 = vmatmul.mubr.bf16.vlgmr.msra.gmra.mrb[0].mxu0 %v654_v14 }
  0xa3   : > { %v424_v32 = vpop.xlane.xlu1 %423 }
  0xa4   : > { %v431_v33 = vmul.f32 0.015625, %v424_v32 }
  0xa6   : > { %v435_v37 = vsub.f32 %v412_v18, %v431_v33 }
  0xa7   : > { %v427_v34 = vpop.xlane.xlu1 %426 }
  0xa8   : > { %v432_v38 = vmul.f32 0.015625, %v427_v34  ;;  %v439_v44 = vmul.f32 %v435_v37, %v435_v37 }
  0xaa   : > { %v436_v42 = vsub.f32 %v409_v20, %v432_v38  ;;  %v447_v47 = vsel %vm358_vm0, %v439_v44, 0.0 }
  0xac   : > { %v440_v49 = vmul.f32 %v436_v42, %v436_v42 }
  0xae   : > { %v450_v51 = vsel %vm358_vm0, %v440_v49, 0.0 }
 0x111   : > { %v396_v23 = vpop.f32.mrb[0].mxu0 }
 0x112   : > { %v410_v25 = vadd.f32 %v406_v22, %v396_v23  ;;  %v398_v26 = vpop.f32.mrb[1].mxu0 }
 0x113   : > { %v399_v27 = vpop.f32.mrb[2].mxu0 }
 0x114   : > { %v411_v28 = vadd.f32 %v407_v24, %v399_v27  ;;  %v401_v29 = vpop.f32.mrb[3].mxu0  ;;  %v416_v30 = vsel %vm358_vm0, %v410_v25, 0.0 }
 0x115   : > { %417 = vadd.xlane.f32.xlu0 %v416_v30 }
 0x116   : > { %v419_v31 = vsel %vm358_vm0, %v411_v28, 0.0 }
 0x119   : > { %420 = vadd.xlane.f32.xlu0 %v419_v31 }
 0x1a2   : > { %v418_v35 = vpop.xlane.xlu0 %417 }
 0x1a3   : > { %v429_v36 = vmul.f32 0.015625, %v418_v35 }
 0x1a5   : > { %v433_v39 = vsub.f32 %v410_v25, %v429_v36 }
 0x1a6   : > { %v421_v40 = vpop.xlane.xlu0 %420 }
 0x1a7   : > { %v430_v41 = vmul.f32 0.015625, %v421_v40  ;;  %v437_v43 = vmul.f32 %v433_v39, %v433_v39 }
 0x1a9   : > { %v434_v45 = vsub.f32 %v411_v28, %v430_v41  ;;  %v441_v46 = vsel %vm358_vm0, %v437_v43, 0.0 }
 0x1aa   : > { %442 = vadd.xlane.f32.xlu0 %v441_v46 }
 0x1ab   : > { %v438_v48 = vmul.f32 %v434_v45, %v434_v45 }
 0x1ad   : > { %v444_v50 = vsel %vm358_vm0, %v438_v48, 0.0 }
 0x1ae   : > { %448 = vadd.xlane.f32.xlu0 %v447_v47  ;;  %445 = vadd.xlane.f32.xlu1 %v444_v50 }
 0x1b2   : > { %451 = vadd.xlane.f32.xlu1 %v450_v51 }
 0x237   : > { %v443_v52 = vpop.xlane.xlu0 %442 }
 0x238   : > { %v453_v53 = vmul.f32 0.015625, %v443_v52 }
 0x23a   : > { %v457_v54 = vadd.f32 1e-05, %v453_v53 }
 0x23b   : > { %v446_v55 = vpop.xlane.xlu1 %445  ;;  %v449_v56 = vpop.xlane.xlu0 %448 }
 0x23c   : > { %657 = vrsqrt.f32 %v457_v54  ;;  %v454_v57 = vmul.f32 0.015625, %v446_v55  ;;  %v455_v58 = vmul.f32 0.015625, %v449_v56 }
 0x23e   : > { %v458_v59 = vadd.f32 1e-05, %v454_v57  ;;  %v459_v60 = vadd.f32 1e-05, %v455_v58 }
 0x23f   : > { %v452_v61 = vpop.xlane.xlu1 %451 }
 0x240   : > { %659 = vrsqrt.f32 %v458_v59  ;;  %v456_v62 = vmul.f32 0.015625, %v452_v61 }
 0x241   : > { %661 = vrsqrt.f32 %v459_v60 }
 0x242   : > { %v460_v63 = vadd.f32 1e-05, %v456_v62 }
 0x244   : > { %663 = vrsqrt.f32 %v460_v63 }
 0x246   : > { %v658_v0 = vpop.eup %657 }
 0x247   : > { %v465_v2 = vmul.f32 %v658_v0, %v433_v39 }
 0x249   : > { %v475_v4 = vmul.f32 %v591_v1, %v465_v2 }
 0x24a   : > { %v660_v5 = vpop.eup %659 }
 0x24b   : > { %v662_v6 = vpop.eup %661  ;;  %v485_v7 = vadd.f32 %v592_v3, %v475_v4  ;;  %v466_v8 = vmul.f32 %v660_v5, %v434_v45 }
 0x24c   : > { %v467_v9 = vmul.f32 %v662_v6, %v435_v37 }
 0x24d   : > { %v476_v10 = vmul.f32 %v591_v1, %v466_v8  ;;  %489 = vst.msk [vmem:[%s244_s10] sm:$0xff] %vm358_vm0, %v485_v7 }
 0x24e   : > { %v664_v11 = vpop.eup %663  ;;  %v477_v12 = vmul.f32 %v591_v1, %v467_v9 }
 0x24f   : > { %v486_v13 = vadd.f32 %v592_v3, %v476_v10  ;;  %v468_v14 = vmul.f32 %v664_v11, %v436_v42 }
 0x250   : > { %v487_v15 = vadd.f32 %v592_v3, %v477_v12 }
 0x251   : > { %v478_v16 = vmul.f32 %v591_v1, %v468_v14  ;;  %490 = vst.msk [vmem:[%s244_s10 + $0x8] sm:$0xff] %vm358_vm0, %v486_v13 }
 0x252   : > { %491 = vst.msk [vmem:[%s244_s10 + $0x10] sm:$0xff] %vm358_vm0, %v487_v15 }
 0x253   : > { %v488_v17 = vadd.f32 %v592_v3, %v478_v16 }
 0x255   : > { %492 = vst.msk [vmem:[%s244_s10 + $0x18] sm:$0xff] %vm358_vm0, %v488_v17 }
 0x256   : > { %678 = shalt.err (!%p675_p3)
}
 0x257   : > { %s679_s18 = scalar_lea.hbm %s895_s26, 512  ;;  %s683_s29 = scalar_lea.hbm %s947_s6, 2048 }
 0x258   : > { %p680_p4 = scmp.ne.s32.totalorder %s895_s26, %s679_s18  ;;  %p684_p9 = scmp.lt.u32.totalorder %s895_s26, %s947_s6 }
 0x259   : > { %p685_p10 = scmp.lt.u32.totalorder %s683_s29, %s679_s18  ;;  %p687_p12 = scmp.lt.u32.totalorder %s679_s18, %s895_s26 }
 0x25a   : > { %p681_p7 = pnand %p680_p4, %p806_p5 }
 0x25b   : > { %p686_p11 = por %p685_p10, %p684_p9 }
 0x25c   : > { %p682_p8 = pneg %p681_p7 }
 0x25d   : > { %p688_p13 = por %p687_p12, %p686_p11 }
 0x25f   : > { %p689_p0 = pnand %p688_p13, %p682_p8 }
 0x261   : > { %692 = shalt.err (!%p689_p0)
}
 0x262   : > { %s731_s11 = smov 128   ;;  %s732_s13 = smov 8  }
 0x263   : > { %600 = dma.vmem_to_hbm [thread:$0]  (%p806_p5), %s897_s12, 512, %s895_s26, %s900_s25, %s731_s11, %s731_s11, %s732_s13  }
 0x264 PF: > { %p606_p1 = scmp.ge.s32.totalorder %s727_s24, 2  ;;  %s522_s14 = sand.u32 1, %s715_s21  }
 0x265   : > { %s523_s15 = scalar_lea.sflag [#allocation3], %s522_s14 }
 0x266   : > { %p603_p2 = pnand %p606_p1, %p810_p6 }
 0x268   : > { %710 = dma.done.wait (!%p603_p2), %s523_s15, 512  }
 0x269   : > { %712 = vsyncadd (!%p603_p2), %s523_s15, 4294966784  ;;  %p16_p3 = scmp.ge.s32.totalorder %s793_s27, 6   ;;  %s950_s21 = smov %s719_s22 }
 0x26a   : > { %s951_s22 = smov %s723_s23  ;;  %s952_s23 = smov %s804_s30 }
 0x26b   : > { %s953_s24 = smov %s793_s27  ;;  %18 = sbr.rel (!%p16_p3) target bundleno = 3 (0x3), region = 79 }
 0x272   :  { %528 = vsyncpa [#allocation3], 1 }
 0x273   :  { %530 = vsyncpa [#allocation3 + $0x1], 1 }

</bundles_post_ra>
